<compile_context>
chip_gen: v6e
topology: v6e:2x2x1
jax: 0.10.0
libtpu: 0.0.40
codegen_flags: <defaults>
</compile_context>

<pallas_src>
import functools

import jax
import jax.numpy as jnp
from jax.experimental import pallas as pl
from jax.experimental.pallas import tpu as pltpu


def _frame_att_kernel(x_ref, w_ref, o_ref, sum_sc, max_sc, *, inv_cd):
    # x_ref:  (1, Cb, T, D) VMEM tile of the input
    # w_ref:  (19,) SMEM     -- [w_avg[0..8], w_max[0..8], bias]
    # o_ref:  (1, 1, T) VMEM output row for this batch element
    # sum_sc / max_sc: (1, T) f32 VMEM accumulators (persist across the C grid axis)
    k = pl.program_id(1)
    nk = pl.num_programs(1)

    x = x_ref[...].astype(jnp.float32)          # (1, Cb, T, D)

    # Reduce C first (pure VPU elementwise add/max over (T, D) slabs), then a single
    # cross-lane (XLU) reduction over D per (b, t) instead of Cb of them.
    part_sum = jnp.sum(x, axis=1)               # (1, T, D)
    part_max = jnp.max(x, axis=1)               # (1, T, D)
    part_sum = jnp.sum(part_sum, axis=-1)       # (1, T)
    part_max = jnp.max(part_max, axis=-1)       # (1, T)

    @pl.when(k == 0)
    def _init():
        sum_sc[...] = part_sum
        max_sc[...] = part_max

    @pl.when(k > 0)
    def _accum():
        sum_sc[...] = sum_sc[...] + part_sum
        max_sc[...] = jnp.maximum(max_sc[...], part_max)

    @pl.when(k == nk - 1)
    def _finalize():
        T = o_ref.shape[-1]
        avg = sum_sc[...] * inv_cd              # (1, T) mean over (C, D)
        mx = max_sc[...]                        # (1, T) max  over (C, D)

        # 9-tap cross-correlation along T with zero padding of 4 on each side:
        #   out[t] = bias + sum_k ( w_avg[k] * avg[t+k-4] + w_max[k] * mx[t+k-4] )
        zpad = jnp.zeros((1, 4), jnp.float32)
        avg_p = jnp.concatenate([zpad, avg, zpad], axis=1)   # (1, T + 8)
        mx_p = jnp.concatenate([zpad, mx, zpad], axis=1)     # (1, T + 8)

        acc = jnp.zeros((1, T), jnp.float32) + w_ref[18]     # bias
        for tap in range(9):                                 # static unroll: 9 taps
            sa = jax.lax.slice(avg_p, (0, tap), (1, tap + T))
            sm = jax.lax.slice(mx_p, (0, tap), (1, tap + T))
            acc = acc + w_ref[tap] * sa + w_ref[9 + tap] * sm

        o_ref[...] = acc.reshape(1, 1, T)


def _pick_c_block(C, per_c_bytes, budget_bytes):
    # Largest divisor of C whose (1, Cb, T, D) tile stays under the per-buffer budget
    # (divisor => no partial blocks => no garbage padding in the sum/max reduction).
    best = 1
    for cb in range(1, C + 1):
        if C % cb == 0 and cb * per_c_bytes <= budget_bytes:
            best = cb
    return best


def frame_att(x, conv_w, conv_b, *, c_block=None):
    """x: (B, C, T, D); conv_w: (1, 2, 9, 1); conv_b: (1,). Returns (B, 1, T, 1) f32."""
    B, C, T, D = x.shape

    # Flat SMEM parameter vector: 9 avg-channel taps, 9 max-channel taps, bias.
    w_flat = jnp.concatenate([
        conv_w[0, 0, :, 0].reshape(9),
        conv_w[0, 1, :, 0].reshape(9),
        conv_b.reshape(1),
    ]).astype(jnp.float32)                                   # (19,)

    if c_block is None:
        # Keep each (1, Cb, T, D) input buffer under ~4 MiB so the double-buffered
        # pair stays well inside even v7x's 64 MiB physical / 32 MiB scoped VMEM.
        per_c_bytes = T * D * x.dtype.itemsize
        c_block = _pick_c_block(C, per_c_bytes, budget_bytes=4 * 1024 * 1024)
    assert C % c_block == 0, (C, c_block)
    nk = C // c_block

    kernel = functools.partial(_frame_att_kernel, inv_cd=1.0 / float(C * D))

    # TODO(synk): optionally stream x as bf16 (f32 accumulation in-kernel) when the
    # caller allows it — this kernel is purely HBM-bandwidth bound.
    out3d = pl.pallas_call(
        kernel,
        out_shape=jax.ShapeDtypeStruct((B, 1, T), jnp.float32),
        grid=(B, nk),
        in_specs=[
            pl.BlockSpec((1, c_block, T, D), lambda b, k: (b, k, 0, 0)),
            pl.BlockSpec(memory_space=pltpu.MemorySpace.SMEM),
        ],
        out_specs=pl.BlockSpec((1, 1, T), lambda b, k: (b, 0, 0)),
        scratch_shapes=[
            pltpu.VMEM((1, T), jnp.float32),   # running sum over (C, D)
            pltpu.VMEM((1, T), jnp.float32),   # running max over (C, D)
        ],
        compiler_params=pltpu.CompilerParams(
            dimension_semantics=("parallel", "arbitrary"),
            vmem_limit_bytes=32 * 1024 * 1024,
        ),
    )(x, w_flat)

    return out3d.reshape(B, 1, T, 1)


def frame_att_reference(x, conv_w, conv_b):
    # Pure-JAX reference matching the PyTorch forward exactly.
    avg = jnp.mean(x, axis=(1, 3))                        # (B, T)
    mx = jnp.max(x, axis=(1, 3))                          # (B, T)
    inp = jnp.stack([avg, mx], axis=1)[..., None]         # (B, 2, T, 1)
    out = jax.lax.conv_general_dilated(
        inp, conv_w, window_strides=(1, 1),
        padding=((4, 4), (0, 0)),
        dimension_numbers=("NCHW", "OIHW", "NCHW"))
    return out + conv_b.reshape(1, 1, 1, 1)               # (B, 1, T, 1)


if __name__ == "__main__":
    key = jax.random.PRNGKey(0)
    kx, kw, kb = jax.random.split(key, 3)

    B, C, T, D = 2, 4, 16, 16
    x = jax.random.normal(kx, (B, C, T, D), dtype=jnp.float32)

    # Deterministic synthetic Conv2d(2, 1, kernel_size=(9, 1), padding=(4, 0)) params.
    conv_w = jax.random.normal(kw, (1, 2, 9, 1), dtype=jnp.float32) * 0.1
    conv_b = jax.random.normal(kb, (1,), dtype=jnp.float32) * 0.1

    ref = frame_att_reference(x, conv_w, conv_b)

    # Single-chunk path (C fits in one block).
    out = frame_att(x, conv_w, conv_b)
    out = jax.block_until_ready(out)
    assert out.shape == (B, 1, T, 1), out.shape
    assert jnp.allclose(out, ref, atol=1e-5, rtol=1e-5), float(jnp.max(jnp.abs(out - ref)))

    # Multi-chunk path: force the C-grid reduction (exercises init/accum/finalize).
    out2 = frame_att(x, conv_w, conv_b, c_block=2)
    out2 = jax.block_until_ready(out2)
    assert jnp.allclose(out2, ref, atol=1e-5, rtol=1e-5), float(jnp.max(jnp.abs(out2 - ref)))

    print("KERNEL_OK")
</pallas_src>

<mosaic_0001>
module attributes {stable_mosaic.version = 11 : i64} {
  func.func @_frame_att_kernel(%arg0: i32, %arg1: i32, %arg2: memref<1x4x16x16xf32, #tpu.memory_space<vmem>>, %arg3: memref<19xf32, #tpu.memory_space<smem>>, %arg4: memref<1x1x16xf32, #tpu.memory_space<vmem>>, %arg5: memref<1x16xf32, #tpu.memory_space<vmem>>, %arg6: memref<1x16xf32, #tpu.memory_space<vmem>>) attributes {dimension_semantics = [#tpu.dimension_semantics<parallel>, #tpu.dimension_semantics<arbitrary>], iteration_bounds = array<i64: 2, 1>, scalar_prefetch = 0 : i64, scratch_operands = 2 : i64, tpu.core_type = #tpu.core_type<tc>, window_params = [{transform_indices = @transform_0, window_bounds = array<i64: 1, 4, 16, 16>}, {transform_indices = @transform_1, window_bounds = array<i64: 19>}, {transform_indices = @transform_2, window_bounds = array<i64: 1, 1, 16>}]} {
    %c0 = arith.constant 0 : index
    %c0_0 = arith.constant 0 : index
    %c0_1 = arith.constant 0 : index
    %c0_2 = arith.constant 0 : index
    %0 = vector.load %arg2[%c0, %c0_0, %c0_1, %c0_2] : memref<1x4x16x16xf32, #tpu.memory_space<vmem>>, vector<1x4x16x16xf32>
    %cst = arith.constant dense<0.000000e+00> : vector<1x16x16xf32>
    %1 = vector.multi_reduction <add>, %0, %cst [1] : vector<1x4x16x16xf32> to vector<1x16x16xf32>
    %cst_3 = arith.constant dense<0xFF800000> : vector<1x16x16xf32>
    %2 = vector.multi_reduction <maximumf>, %0, %cst_3 [1] : vector<1x4x16x16xf32> to vector<1x16x16xf32>
    %cst_4 = arith.constant dense<0.000000e+00> : vector<1x16xf32>
    %3 = vector.multi_reduction <add>, %1, %cst_4 [2] : vector<1x16x16xf32> to vector<1x16xf32>
    %cst_5 = arith.constant dense<0xFF800000> : vector<1x16xf32>
    %4 = vector.multi_reduction <maximumf>, %2, %cst_5 [2] : vector<1x16x16xf32> to vector<1x16xf32>
    %c0_i32 = arith.constant 0 : i32
    %5 = arith.cmpi eq, %arg1, %c0_i32 : i32
    %6 = arith.extui %5 : i1 to i32
    %c0_i32_6 = arith.constant 0 : i32
    %7 = arith.cmpi ne, %6, %c0_i32_6 : i32
    scf.if %7 {
      %c0_11 = arith.constant 0 : index
      %c0_12 = arith.constant 0 : index
      %14 = vector.load %arg5[%c0_11, %c0_12] : memref<1x16xf32, #tpu.memory_space<vmem>>, vector<1x16xf32>
      tpu.vector_store %arg5[%c0_11, %c0_12], %3 {strides = array<i32>} : memref<1x16xf32, #tpu.memory_space<vmem>>, vector<1x16xf32>,
      %c0_13 = arith.constant 0 : index
      %c0_14 = arith.constant 0 : index
      %15 = vector.load %arg6[%c0_13, %c0_14] : memref<1x16xf32, #tpu.memory_space<vmem>>, vector<1x16xf32>
      tpu.vector_store %arg6[%c0_13, %c0_14], %4 {strides = array<i32>} : memref<1x16xf32, #tpu.memory_space<vmem>>, vector<1x16xf32>,
    } else {
    }
    %c0_i32_7 = arith.constant 0 : i32
    %8 = arith.cmpi sgt, %arg1, %c0_i32_7 : i32
    %9 = arith.extui %8 : i1 to i32
    %c0_i32_8 = arith.constant 0 : i32
    %10 = arith.cmpi ne, %9, %c0_i32_8 : i32
    scf.if %10 {
      %c0_11 = arith.constant 0 : index
      %c0_12 = arith.constant 0 : index
      %14 = vector.load %arg5[%c0_11, %c0_12] : memref<1x16xf32, #tpu.memory_space<vmem>>, vector<1x16xf32>
      %15 = arith.addf %14, %3 : vector<1x16xf32>
      %c0_13 = arith.constant 0 : index
      %c0_14 = arith.constant 0 : index
      %16 = vector.load %arg5[%c0_13, %c0_14] : memref<1x16xf32, #tpu.memory_space<vmem>>, vector<1x16xf32>
      tpu.vector_store %arg5[%c0_13, %c0_14], %15 {strides = array<i32>} : memref<1x16xf32, #tpu.memory_space<vmem>>, vector<1x16xf32>,
      %c0_15 = arith.constant 0 : index
      %c0_16 = arith.constant 0 : index
      %17 = vector.load %arg6[%c0_15, %c0_16] : memref<1x16xf32, #tpu.memory_space<vmem>>, vector<1x16xf32>
      %18 = arith.maximumf %17, %4 : vector<1x16xf32>
      %c0_17 = arith.constant 0 : index
      %c0_18 = arith.constant 0 : index
      %19 = vector.load %arg6[%c0_17, %c0_18] : memref<1x16xf32, #tpu.memory_space<vmem>>, vector<1x16xf32>
      tpu.vector_store %arg6[%c0_17, %c0_18], %18 {strides = array<i32>} : memref<1x16xf32, #tpu.memory_space<vmem>>, vector<1x16xf32>,
    } else {
    }
    %c0_i32_9 = arith.constant 0 : i32
    %11 = arith.cmpi eq, %arg1, %c0_i32_9 : i32
    %12 = arith.extui %11 : i1 to i32
    %c0_i32_10 = arith.constant 0 : i32
    %13 = arith.cmpi ne, %12, %c0_i32_10 : i32
    scf.if %13 {
      %c0_11 = arith.constant 0 : index
      %c0_12 = arith.constant 0 : index
      %14 = vector.load %arg5[%c0_11, %c0_12] : memref<1x16xf32, #tpu.memory_space<vmem>>, vector<1x16xf32>
      %cst_13 = arith.constant 1.562500e-02 : f32
      %15 = vector.broadcast %cst_13 : f32 to vector<1x16xf32>
      %16 = arith.mulf %14, %15 : vector<1x16xf32>
      %c0_14 = arith.constant 0 : index
      %c0_15 = arith.constant 0 : index
      %17 = vector.load %arg6[%c0_14, %c0_15] : memref<1x16xf32, #tpu.memory_space<vmem>>, vector<1x16xf32>
      %cst_16 = arith.constant 0.000000e+00 : f32
      %18 = vector.broadcast %cst_16 : f32 to vector<1x4xf32>
      %19 = tpu.concatenate %18, %16, %18 in 1 : vector<1x4xf32>, vector<1x16xf32>, vector<1x4xf32> -> vector<1x24xf32>
      %20 = tpu.concatenate %18, %17, %18 in 1 : vector<1x4xf32>, vector<1x16xf32>, vector<1x4xf32> -> vector<1x24xf32>
      %cst_17 = arith.constant 0.000000e+00 : f32
      %21 = vector.broadcast %cst_17 : f32 to vector<1x16xf32>
      %c18 = arith.constant 18 : index
      %22 = memref.load %arg3[%c18] : memref<19xf32, #tpu.memory_space<smem>>
      %23 = vector.broadcast %22 : f32 to vector<1x16xf32>
      %24 = arith.addf %21, %23 : vector<1x16xf32>
      %25 = vector.extract_strided_slice %19 {offsets = [0, 0], sizes = [1, 16], strides = [1, 1]} : vector<1x24xf32> to vector<1x16xf32>
      %26 = vector.extract_strided_slice %20 {offsets = [0, 0], sizes = [1, 16], strides = [1, 1]} : vector<1x24xf32> to vector<1x16xf32>
      %c0_18 = arith.constant 0 : index
      %27 = memref.load %arg3[%c0_18] : memref<19xf32, #tpu.memory_space<smem>>
      %28 = vector.broadcast %27 : f32 to vector<1x16xf32>
      %29 = arith.mulf %28, %25 : vector<1x16xf32>
      %30 = arith.addf %24, %29 : vector<1x16xf32>
      %c9 = arith.constant 9 : index
      %31 = memref.load %arg3[%c9] : memref<19xf32, #tpu.memory_space<smem>>
      %32 = vector.broadcast %31 : f32 to vector<1x16xf32>
      %33 = arith.mulf %32, %26 : vector<1x16xf32>
      %34 = arith.addf %30, %33 : vector<1x16xf32>
      %35 = vector.extract_strided_slice %19 {offsets = [0, 1], sizes = [1, 16], strides = [1, 1]} : vector<1x24xf32> to vector<1x16xf32>
      %36 = vector.extract_strided_slice %20 {offsets = [0, 1], sizes = [1, 16], strides = [1, 1]} : vector<1x24xf32> to vector<1x16xf32>
      %c1 = arith.constant 1 : index
      %37 = memref.load %arg3[%c1] : memref<19xf32, #tpu.memory_space<smem>>
      %38 = vector.broadcast %37 : f32 to vector<1x16xf32>
      %39 = arith.mulf %38, %35 : vector<1x16xf32>
      %40 = arith.addf %34, %39 : vector<1x16xf32>
      %c10 = arith.constant 10 : index
      %41 = memref.load %arg3[%c10] : memref<19xf32, #tpu.memory_space<smem>>
      %42 = vector.broadcast %41 : f32 to vector<1x16xf32>
      %43 = arith.mulf %42, %36 : vector<1x16xf32>
      %44 = arith.addf %40, %43 : vector<1x16xf32>
      %45 = vector.extract_strided_slice %19 {offsets = [0, 2], sizes = [1, 16], strides = [1, 1]} : vector<1x24xf32> to vector<1x16xf32>
      %46 = vector.extract_strided_slice %20 {offsets = [0, 2], sizes = [1, 16], strides = [1, 1]} : vector<1x24xf32> to vector<1x16xf32>
      %c2 = arith.constant 2 : index
      %47 = memref.load %arg3[%c2] : memref<19xf32, #tpu.memory_space<smem>>
      %48 = vector.broadcast %47 : f32 to vector<1x16xf32>
      %49 = arith.mulf %48, %45 : vector<1x16xf32>
      %50 = arith.addf %44, %49 : vector<1x16xf32>
      %c11 = arith.constant 11 : index
      %51 = memref.load %arg3[%c11] : memref<19xf32, #tpu.memory_space<smem>>
      %52 = vector.broadcast %51 : f32 to vector<1x16xf32>
      %53 = arith.mulf %52, %46 : vector<1x16xf32>
      %54 = arith.addf %50, %53 : vector<1x16xf32>
      %55 = vector.extract_strided_slice %19 {offsets = [0, 3], sizes = [1, 16], strides = [1, 1]} : vector<1x24xf32> to vector<1x16xf32>
      %56 = vector.extract_strided_slice %20 {offsets = [0, 3], sizes = [1, 16], strides = [1, 1]} : vector<1x24xf32> to vector<1x16xf32>
      %c3 = arith.constant 3 : index
      %57 = memref.load %arg3[%c3] : memref<19xf32, #tpu.memory_space<smem>>
      %58 = vector.broadcast %57 : f32 to vector<1x16xf32>
      %59 = arith.mulf %58, %55 : vector<1x16xf32>
      %60 = arith.addf %54, %59 : vector<1x16xf32>
      %c12 = arith.constant 12 : index
      %61 = memref.load %arg3[%c12] : memref<19xf32, #tpu.memory_space<smem>>
      %62 = vector.broadcast %61 : f32 to vector<1x16xf32>
      %63 = arith.mulf %62, %56 : vector<1x16xf32>
      %64 = arith.addf %60, %63 : vector<1x16xf32>
      %65 = vector.extract_strided_slice %19 {offsets = [0, 4], sizes = [1, 16], strides = [1, 1]} : vector<1x24xf32> to vector<1x16xf32>
      %66 = vector.extract_strided_slice %20 {offsets = [0, 4], sizes = [1, 16], strides = [1, 1]} : vector<1x24xf32> to vector<1x16xf32>
      %c4 = arith.constant 4 : index
      %67 = memref.load %arg3[%c4] : memref<19xf32, #tpu.memory_space<smem>>
      %68 = vector.broadcast %67 : f32 to vector<1x16xf32>
      %69 = arith.mulf %68, %65 : vector<1x16xf32>
      %70 = arith.addf %64, %69 : vector<1x16xf32>
      %c13 = arith.constant 13 : index
      %71 = memref.load %arg3[%c13] : memref<19xf32, #tpu.memory_space<smem>>
      %72 = vector.broadcast %71 : f32 to vector<1x16xf32>
      %73 = arith.mulf %72, %66 : vector<1x16xf32>
      %74 = arith.addf %70, %73 : vector<1x16xf32>
      %75 = vector.extract_strided_slice %19 {offsets = [0, 5], sizes = [1, 16], strides = [1, 1]} : vector<1x24xf32> to vector<1x16xf32>
      %76 = vector.extract_strided_slice %20 {offsets = [0, 5], sizes = [1, 16], strides = [1, 1]} : vector<1x24xf32> to vector<1x16xf32>
      %c5 = arith.constant 5 : index
      %77 = memref.load %arg3[%c5] : memref<19xf32, #tpu.memory_space<smem>>
      %78 = vector.broadcast %77 : f32 to vector<1x16xf32>
      %79 = arith.mulf %78, %75 : vector<1x16xf32>
      %80 = arith.addf %74, %79 : vector<1x16xf32>
      %c14 = arith.constant 14 : index
      %81 = memref.load %arg3[%c14] : memref<19xf32, #tpu.memory_space<smem>>
      %82 = vector.broadcast %81 : f32 to vector<1x16xf32>
      %83 = arith.mulf %82, %76 : vector<1x16xf32>
      %84 = arith.addf %80, %83 : vector<1x16xf32>
      %85 = vector.extract_strided_slice %19 {offsets = [0, 6], sizes = [1, 16], strides = [1, 1]} : vector<1x24xf32> to vector<1x16xf32>
      %86 = vector.extract_strided_slice %20 {offsets = [0, 6], sizes = [1, 16], strides = [1, 1]} : vector<1x24xf32> to vector<1x16xf32>
      %c6 = arith.constant 6 : index
      %87 = memref.load %arg3[%c6] : memref<19xf32, #tpu.memory_space<smem>>
      %88 = vector.broadcast %87 : f32 to vector<1x16xf32>
      %89 = arith.mulf %88, %85 : vector<1x16xf32>
      %90 = arith.addf %84, %89 : vector<1x16xf32>
      %c15 = arith.constant 15 : index
      %91 = memref.load %arg3[%c15] : memref<19xf32, #tpu.memory_space<smem>>
      %92 = vector.broadcast %91 : f32 to vector<1x16xf32>
      %93 = arith.mulf %92, %86 : vector<1x16xf32>
      %94 = arith.addf %90, %93 : vector<1x16xf32>
      %95 = vector.extract_strided_slice %19 {offsets = [0, 7], sizes = [1, 16], strides = [1, 1]} : vector<1x24xf32> to vector<1x16xf32>
      %96 = vector.extract_strided_slice %20 {offsets = [0, 7], sizes = [1, 16], strides = [1, 1]} : vector<1x24xf32> to vector<1x16xf32>
      %c7 = arith.constant 7 : index
      %97 = memref.load %arg3[%c7] : memref<19xf32, #tpu.memory_space<smem>>
      %98 = vector.broadcast %97 : f32 to vector<1x16xf32>
      %99 = arith.mulf %98, %95 : vector<1x16xf32>
      %100 = arith.addf %94, %99 : vector<1x16xf32>
      %c16 = arith.constant 16 : index
      %101 = memref.load %arg3[%c16] : memref<19xf32, #tpu.memory_space<smem>>
      %102 = vector.broadcast %101 : f32 to vector<1x16xf32>
      %103 = arith.mulf %102, %96 : vector<1x16xf32>
      %104 = arith.addf %100, %103 : vector<1x16xf32>
      %105 = vector.extract_strided_slice %19 {offsets = [0, 8], sizes = [1, 16], strides = [1, 1]} : vector<1x24xf32> to vector<1x16xf32>
      %106 = vector.extract_strided_slice %20 {offsets = [0, 8], sizes = [1, 16], strides = [1, 1]} : vector<1x24xf32> to vector<1x16xf32>
      %c8 = arith.constant 8 : index
      %107 = memref.load %arg3[%c8] : memref<19xf32, #tpu.memory_space<smem>>
      %108 = vector.broadcast %107 : f32 to vector<1x16xf32>
      %109 = arith.mulf %108, %105 : vector<1x16xf32>
      %110 = arith.addf %104, %109 : vector<1x16xf32>
      %c17 = arith.constant 17 : index
      %111 = memref.load %arg3[%c17] : memref<19xf32, #tpu.memory_space<smem>>
      %112 = vector.broadcast %111 : f32 to vector<1x16xf32>
      %113 = arith.mulf %112, %106 : vector<1x16xf32>
      %114 = arith.addf %110, %113 : vector<1x16xf32>
      %115 = vector.shape_cast %114 : vector<1x16xf32> to vector<1x1x16xf32>
      %c0_19 = arith.constant 0 : index
      %c0_20 = arith.constant 0 : index
      %c0_21 = arith.constant 0 : index
      %116 = vector.load %arg4[%c0_19, %c0_20, %c0_21] : memref<1x1x16xf32, #tpu.memory_space<vmem>>, vector<1x1x16xf32>
      tpu.vector_store %arg4[%c0_19, %c0_20, %c0_21], %115 {strides = array<i32>} : memref<1x1x16xf32, #tpu.memory_space<vmem>>, vector<1x1x16xf32>,
    } else {
    }
    return
  }
  func.func @transform_0(%arg0: i32, %arg1: i32) -> (i32, i32, i32, i32) {
    %c0_i32 = arith.constant 0 : i32
    %c0_i32_0 = arith.constant 0 : i32
    %c0_i32_1 = arith.constant 0 : i32
    return %arg0, %arg1, %c0_i32, %c0_i32_0 : i32, i32, i32, i32
  }
  func.func @transform_1(%arg0: i32, %arg1: i32) -> i32 {
    %c0_i32 = arith.constant 0 : i32
    %c0_i32_0 = arith.constant 0 : i32
    return %c0_i32 : i32
  }
  func.func @transform_2(%arg0: i32, %arg1: i32) -> (i32, i32, i32) {
    %c0_i32 = arith.constant 0 : i32
    %c0_i32_0 = arith.constant 0 : i32
    %c0_i32_1 = arith.constant 0 : i32
    return %arg0, %c0_i32, %c0_i32_0 : i32, i32, i32
  }
}

</mosaic_0001>

<bundles_post_ra>
// kernel: tpu_custom_call.1
= control target key start
LH: loop header
LB: loop body
LE: loop exit
PB: predicated region body
PF: predicated region fallthrough
CT: control target
= control target key end

     0   :  { %7 = vsyncpa [#allocation5], 0  ;;  %s1449_s0 = inlined_call_operand.hbm [shape: f32[2,4,16,16], index: 0, kind: input, shape index: {}]   ;;  %s1450_s1 = inlined_call_operand.vmem [shape: f32[19], index: 1, kind: input, shape index: {}]   ;;  %s1451_s2 = inlined_call_operand.hbm [shape: f32[2,1,16], index: 2, kind: output, shape index: {}]  }
   0x1   :  { %9 = vsyncpa [#allocation5 + $0x1], 0 }
   0x2   :  { %10 = vsyncpa [#allocation7], 0 }
   0x3   :  { %11 = vsyncpa [#allocation6], 0 }
   0x4   :  { %13 = vsyncpa [#allocation6 + $0x1], 0  ;;  %s1227_s9 = smov 0   ;;  %s1229_s10 = smov 0  }
   0x5   :  { %s1231_s11 = smov 0   ;;  %s1233_s12 = smov 0  }
   0x6   :  { %s1235_s13 = smov 0   ;;  %s1237_s14 = smov 0  }
   0x7 LB: > { %s951_s15 = sadd.s32 4294967295, %s1196_s14   ;;  %s952_s16 = sadd.s32 4294967294, %s1196_s14   ;;  %s1196_s14 = sphi %s1237_s14, %s19_s14   ;;  %s1192_s13 = sphi %s1235_s13, %s1469_s13   ;;  %s1188_s12 = sphi %s1233_s12, %s1468_s12   ;;  %s1184_s11 = sphi %s1231_s11, %s1467_s11   ;;  %s1180_s10 = sphi %s1229_s10, %s1466_s10   ;;  %s1176_s9 = sphi %s1227_s9, %s1465_s9  }
   0x8   : > { %s40_s17 = sadd.s32 1, %s1184_s11  ;;  %p47_p0 = scmp.ne.s32.totalorder %s1184_s11, %s1180_s10 }
   0x9   : > { %p48_p1 = scmp.eq.s32.totalorder %s1196_s14, 0  ;;  %p53_p2 = scmp.ne.s32.totalorder %s1180_s10, %s1176_s9 }
   0xa   : > { %p1265_p3 = scmp.eq.s32.totalorder %s951_s15, 0  ;;  %p98_p4 = scmp.eq.s32.totalorder %s951_s15, 1 }
   0xb   : > { %p1269_p5 = por %p48_p1, %p47_p0  ;;  %p104_p6 = scmp.eq.s32.totalorder %s952_s16, 1 }
   0xc   : > { %p1275_p7 = por %p1265_p3, %p53_p2  ;;  %p1279_p8 = por %p98_p4, %p47_p0 }
   0xd   : > { %p1283_p9 = por %p104_p6, %p53_p2  ;;  %p953_p10 = scmp.ge.s32.totalorder %s1196_s14, 1 }
   0xe   : > { %s1456_s21 = scalar_select %p1279_p8, 1, 0 }
   0xf   : > { %s1457_s22 = scalar_select %p1283_p9, 1, 0 }
  0x10   : > { %p111_p11 = scmp.lt.s32.totalorder %s1196_s14, 3  ;;  %s124_s25 = sshll.u32 %s1450_s1, 4  ;;  %s125_s25 = int_to_ptr.vmem [resolvable:$true] %s124_s25 }
  0x11   : > { %p1006_p0 = scmp.lt.s32.totalorder %s1196_s14, 2  ;;  %s31_s29 = sadd.s32 1, %s1192_s13 }
  0x12   : > { %p1292_p12 = pnand %p953_p10, %p111_p11  ;;  %p1313_p6 = scmp.ge.s32.totalorder %s31_s29, 2 }
  0x13   : > { %p1302_p2 = pnand %p1006_p0, %p1269_p5  ;;  %s135_s3 = sand.u32 1, %s1184_s11  }
  0x14   : > { %p993_p1 = pneg %p1292_p12  ;;  %s1069_s4 = scalar_lea.vmem %s125_s25, 16 }
  0x15   : > { %p1070_p10 = scmp.ne.s32.totalorder %s125_s25, %s1069_s4  ;;  %p1077_p13 = scmp.lt.s32.totalorder %s125_s25, %s125_s25 }
  0x16   : > { %p1308_p4 = pnand %p993_p1, %p1265_p3  ;;  %p1078_p9 = scmp.lt.s32.totalorder %s1069_s4, %s1069_s4 }
  0x18   : > { %p1071_p11 = pneg %p1308_p4  ;;  %p1079_p8 = por %p1078_p9, %p1077_p13 }
  0x1a   : > { %p1072_p5 = pnand %p1071_p11, %p1070_p10 }
  0x1c   : > { %p1073_p0 = pneg %p1072_p5 }
  0x1e   : > { %p1080_p1 = pnand %p1079_p8, %p1073_p0 }
  0x20   : > { %1083 = shalt.err (!%p1080_p1)
}
  0x21   : > { %s1198_s5 = smov [#allocation8]   ;;  %s1471_s29 = smov (%p1313_p6, %s31_s29), 0 }
  0x22   : > { %996 = dma.vmem_to_smem (!%p1308_p4), %s125_s25, 16, %s1198_s5, [#allocation7]  }
  0x23   : > { %s956_s6 = sshll.u32 %s135_s3, 6  ;;  %s35_s7 = ssub.s32 %s1192_s13, %s1471_s29 }
  0x24   : > { %p38_p10 = scmp.eq.s32.totalorder %s35_s7, 0  ;;  %s984_s8 = sshll.u32 %s1192_s13, 10 }
  0x25   : > { %s148_s19 = scalar_lea.hbm %s1449_s0, %s984_s8  ;;  %s139_s23 = scalar_lea.vmem [#allocation4], %s956_s6 }
  0x26   : > { %s149_s24 = sshll.u32 %s139_s23, 4  ;;  %s136_s4 = scalar_lea.sflag [#allocation5], %s135_s3  ;;  %s150_s24 = int_to_ptr.vmem [resolvable:$true] %s149_s24 }
  0x27   : > { %s1335_s28 = scalar_select %p38_p10, %s1184_s11, %s40_s17  }
  0x28   : > { %p1086_p8 = pneg %p1302_p2  ;;  %s1097_s25 = scalar_lea.vmem %s150_s24, 1024 }
  0x29   : > { %p1098_p9 = scmp.ne.s32.totalorder %s150_s24, %s1097_s25  ;;  %s1199_s30 = smov [#allocation4]  }
  0x2a   : > { %s1102_s5 = sshll.u32 %s1199_s30, 4  ;;  %s1103_s5 = int_to_ptr.vmem [resolvable:$false] %s1102_s5 }
  0x2b   : > { %p1100_p13 = pnand %p1098_p9, %p1086_p8  ;;  %s1104_s7 = scalar_lea.vmem %s1103_s5, 2048 }
  0x2c   : > { %p1105_p6 = scmp.lt.s32.totalorder %s150_s24, %s1103_s5  ;;  %p1106_p11 = scmp.lt.s32.totalorder %s1104_s7, %s1097_s25 }
  0x2d   : > { %p1101_p4 = pneg %p1100_p13 }
  0x2e   : > { %p1107_p5 = por %p1106_p11, %p1105_p6 }
  0x30   : > { %p1108_p0 = pnand %p1107_p5, %p1101_p4 }
  0x32   : > { %1111 = shalt.err (!%p1108_p0)
}
  0x33   : > { %s1200_s6 = smov 128   ;;  %s1201_s17 = smov 8  }
  0x34   : > { %1000 = dma.hbm_to_vmem [thread:$0]  (!%p1302_p2), %s148_s19, 1024, %s150_s24, %s136_s4, %s1200_s6, %s1200_s6, %s1201_s17  }
  0x35   : > { %161 = sbr.rel (%p1292_p12) target bundleno = 510 (0x1fe), region = 28  ;;  %s1344_s3 = sand.u32 (!%p1292_p12), 1, %s1180_s10  }
  0x36   : > { %s960_s8 = sshll.u32 (!%p1292_p12), %s1344_s3, 6  ;;  %s164_s15 = scalar_lea.sflag (!%p1292_p12), [#allocation5], %s1344_s3 }
  0x37   : > { %s167_s16 = scalar_lea.vmem (!%p1292_p12), [#allocation4], %s960_s8 }
  0x3a   : > { %1163 = dma.done.wait (%p1275_p7), %s164_s15, 1024  }
  0x3b   : > { %1165 = vsyncadd (%p1275_p7), %s164_s15, 4294966272 }
  0x3c   : > { %1167 = dma.done.wait (%p1265_p3), [#allocation7], 16  }
  0x3d   : > { %1169 = vsyncadd (%p1265_p3), [#allocation7], 4294967280 }
  0x3e   : > { %176 = sfence }
  0x3f   : > { %v193_v0 = vld [vmem:[%s167_s16] sm:$0xff]  ;;  %v195_v1 = vld [vmem:[%s167_s16 + $0x10] sm:$0xff]  ;;  %vm201_vm0 = vcmask 130048   ;;  %v194_v8 = vld [vmem:[%s167_s16 + $0x8] sm:$0xff]  ;;  %v248_v40 = vlaneseq  ;;  %vm259_vm1 = vcmask 130112   ;;  %vm262_vm2 = vcmask 122880  }
  0x40   : > { %v197_v2 = vld [vmem:[%s167_s16 + $0x20] sm:$0xff]  ;;  %v199_v3 = vld [vmem:[%s167_s16 + $0x30] sm:$0xff]  ;;  %v202_v4 = vsel %vm201_vm0, %v193_v0, 0.0  ;;  %v203_v5 = vsel %vm201_vm0, %v195_v1, 0.0  ;;  %v216_v7 = vsel %vm201_vm0, %v193_v0, -inf  ;;  %v217_v11 = vsel %vm201_vm0, %v195_v1, -inf }
  0x41   : > { %v205_v6 = vsel %vm201_vm0, %v197_v2, 0.0  ;;  %v204_v9 = vadd.f32 %v203_v5, %v202_v4  ;;  %v207_v10 = vsel %vm201_vm0, %v199_v3, 0.0  ;;  %v218_v12 = vsel %vm201_vm0, %v197_v2, -inf  ;;  %v196_v13 = vld [vmem:[%s167_s16 + $0x18] sm:$0xff]  ;;  %v198_v14 = vld [vmem:[%s167_s16 + $0x28] sm:$0xff]  ;;  %s1202_s18 = smov 4  }
  0x42   : > { %v200_v15 = vld [vmem:[%s167_s16 + $0x38] sm:$0xff]  ;;  %v219_v16 = vmax.f32 %v216_v7, %v218_v12  ;;  %v220_v17 = vsel %vm201_vm0, %v199_v3, -inf  ;;  %v209_v18 = vsel %vm201_vm0, %v194_v8, 0.0  ;;  %v210_v19 = vsel %vm201_vm0, %v196_v13, 0.0  ;;  %s967_s20 = sld [smem:[#allocation8 + $0x2]]  ;;  %s1203_s6 = smov 126  }
  0x43   : > { %v206_v20 = vadd.f32 %v205_v6, %v204_v9  ;;  %v221_v21 = vmax.f32 %v217_v11, %v220_v17  ;;  %v211_v22 = vadd.f32 %v210_v19, %v209_v18  ;;  %v212_v23 = vsel %vm201_vm0, %v198_v14, 0.0  ;;  %s965_s26 = sld [smem:[#allocation8 + $0x1]]  ;;  %s1204_s17 = smov 127  }
  0x44   : > { %v214_v24 = vsel %vm201_vm0, %v200_v15, 0.0  ;;  %v223_v25 = vsel %vm201_vm0, %v194_v8, -inf  ;;  %v224_v26 = vsel %vm201_vm0, %v196_v13, -inf  ;;  %v225_v27 = vsel %vm201_vm0, %v198_v14, -inf  ;;  %s1378_s27 = sld [smem:[#allocation8 + $0x3]]  ;;  %s1205_s16 = smov 125  }
  0x45   : > { %v208_v28 = vadd.f32 %v207_v10, %v206_v20  ;;  %v222_v29 = vmax.f32 %v219_v16, %v221_v21  ;;  %v213_v30 = vadd.f32 %v212_v23, %v211_v22  ;;  %v226_v31 = vmax.f32 %v223_v25, %v225_v27  ;;  %s1380_s19 = sld [smem:[#allocation8 + $0xa]]  ;;  %p1462_p7 = scmp.ne.s32.totalorder %s1456_s21, 0 }
  0x46   : > { %v227_v32 = vsel %vm201_vm0, %v200_v15, -inf  ;;  %v249_v41 = vand.u32 127, %v248_v40  ;;  %v251_v42 = vshrl.u32 %v248_v40, 7  ;;  %s711_s23 = sld [smem:[#allocation8]]  ;;  %vm694_vm3 = vcmask 31744  }
  0x47   : > { %v230_v33 = vsel %vm201_vm0, %v208_v28, 0.0  ;;  %v236_v34 = vsel %vm201_vm0, %v222_v29, -inf  ;;  %v215_v35 = vadd.f32 %v214_v24, %v213_v30  ;;  %v228_v36 = vmax.f32 %v224_v26, %v227_v32  ;;  %s1382_s24 = sld [smem:[#allocation8 + $0x12]] }
  0x48   : > { %231 = vadd.xlane.f32.xlu0 %v230_v33  ;;  %237 = vmax.xlane.f32.xlu1 %v236_v34  ;;  %v254_v43 = vadd.s32 4294967288, %v249_v41  ;;  %v252_v46 = vsub.s32 %v249_v41, %v251_v42  ;;  %v689_v56 = vsub.s32 0, %v251_v42  ;;  %s964_s4 = sld [smem:[#allocation8 + $0x9]]  ;;  %vm696_vm4 = vcmask 162816  }
  0x49   : > { %v233_v37 = vsel %vm201_vm0, %v215_v35, 0.0  ;;  %v229_v38 = vmax.f32 %v226_v31, %v228_v36  ;;  %s1384_s25 = sld [smem:[#allocation8 + $0x4]]  ;;  %v736_v63 = vstv %s967_s20  ;;  %v720_v0 = vstv %s965_s26  ;;  %s1206_s26 = smov 124  }
  0x4a   : > { %v257_v47 = vsub.s32 %v254_v43, %v251_v42  ;;  %s1386_s30 = sld [smem:[#allocation8 + $0xb]]  ;;  %v752_v7 = vstv %s1378_s27 }
  0x4b   : > { %v239_v39 = vsel %vm201_vm0, %v229_v38, -inf  ;;  %s1389_s5 = sld [smem:[#allocation8 + $0x5]]  ;;  %v728_v9 = vstv %s1380_s19 }
  0x4c   : > { %234 = vadd.xlane.f32.xlu0 %v233_v37  ;;  %240 = vmax.xlane.f32.xlu1 %v239_v39  ;;  %v712_v4 = vstv %s711_s23  ;;  %s970_s7 = sld [smem:[#allocation8 + $0xc]]  ;;  %s1207_s23 = smov 123  }
  0x4d   : > { %v709_v10 = vstv %s1382_s24  ;;  %s975_s8 = sld [smem:[#allocation8 + $0x6]] }
  0x4e   : > { %v716_v11 = vstv %s964_s4  ;;  %s972_s15 = sld [smem:[#allocation8 + $0xd]]  ;;  %s1208_s4 = smov 122  }
  0x4f   : > { %v768_v17 = vstv %s1384_s25  ;;  %s974_s20 = sld [smem:[#allocation8 + $0xe]] }
  0x50   : > { %v744_v18 = vstv %s1386_s30  ;;  %s979_s27 = sld [smem:[#allocation8 + $0x8]]  ;;  %s1209_s30 = smov 121  }
  0x51   : > { %v784_v22 = vstv %s1389_s5  ;;  %s976_s19 = sld [smem:[#allocation8 + $0xf]]  ;;  %s1210_s5 = smov 120  }
  0x52   : > { %v760_v23 = vstv %s970_s7  ;;  %s978_s24 = sld [smem:[#allocation8 + $0x10]]  ;;  %s981_s7 = sshll.u32 %s1188_s12, 4 }
  0x53   : > { %v800_v26 = vstv %s975_s8  ;;  %s980_s25 = sld [smem:[#allocation8 + $0x11]] }
  0x54   : > { %v776_v27 = vstv %s972_s15 }
  0x55   : > { %v792_v31 = vstv %s974_s20 }
  0x56   : > { %v832_v34 = vstv %s979_s27 }
  0x57   : > { %v808_v35 = vstv %s976_s19 }
  0x58   : > { %v824_v38 = vstv %s978_s24 }
  0x59   : > { %v840_v40 = vstv %s980_s25 }
  0xd1   : > { %v232_v44 = vpop.xlane.xlu0 %231  ;;  %v238_v45 = vpop.xlane.xlu1 %237 }
  0xd2   : > { %v269_v48 = vrot.slane %v238_v45, %v252_v46  ;;  %v253_v51 = vrot.slane %v232_v44, %v252_v46 }
  0xd5   : > { %v235_v49 = vpop.xlane.xlu0 %234  ;;  %v241_v50 = vpop.xlane.xlu1 %240 }
  0xd6   : > { %v258_v52 = vrot.slane %v235_v49, %v257_v47  ;;  %v273_v53 = vrot.slane %v241_v50, %v257_v47 }
  0xd8   : > { %v260_v54 = vsel %vm259_vm1, %v258_v52, %v253_v51  ;;  %v274_v55 = vsel %vm259_vm1, %v273_v53, %v269_v48 }
  0xd9   : > { %263 = vst.msk [vmem:[#allocation2] sm:$0x1] %vm262_vm2, %v260_v54  ;;  %276 = vst.msk [vmem:[#allocation3] sm:$0x1] %vm262_vm2, %v274_v55 }
  0xe0   : > { %v962_v57 = vld [vmem:[#allocation3] ss:$0 sm:$0xff]  ;;  %v683_v58 = vld [vmem:[#allocation2] sm:$0x1] }
  0xe1   : > { %703 = vrot.lane.b32.xlu1 %v962_v57, %s1202_s18  ;;  %v684_v59 = vmul.f32 0.015625, %v683_v58 }
  0xe3   : > { %v690_v60 = vrot.slane %v684_v59, %v689_v56 }
  0xe5   : > { %691 = vrot.lane.b32.xlu0 %v690_v60, %s1202_s18  ;;  %s977_s18 = sld [smem:[#allocation8 + $0x7]] }
  0xeb   : > { %v816_v30 = vstv %s977_s18  ;;  %s850_s18 = scalar_lea.sflag [#allocation6], %s1344_s3 }
 0x153   : > { %v704_v61 = vpop.permute.xlu1 %703 }
 0x154   : > { %v706_v1 = vsel %vm694_vm3, 0.0, %v704_v61 }
 0x155   : > { %v1391_v8 = vsel %vm696_vm4, %v706_v1, 0.0 }
 0x156   : > { %v729_v14 = vmul.f32 %v728_v9, %v1391_v8  ;;  %v717_v15 = vmul.f32 %v716_v11, %v1391_v8  ;;  %v745_v21 = vmul.f32 %v744_v18, %v1391_v8  ;;  %v761_v25 = vmul.f32 %v760_v23, %v1391_v8 }
 0x157   : > { %v692_v62 = vpop.permute.xlu0 %691  ;;  %v777_v29 = vmul.f32 %v776_v27, %v1391_v8  ;;  %v793_v33 = vmul.f32 %v792_v31, %v1391_v8  ;;  %v809_v37 = vmul.f32 %v808_v35, %v1391_v8  ;;  %v825_v39 = vmul.f32 %v824_v38, %v1391_v8 }
 0x158   : > { %v695_v2 = vsel %vm694_vm3, 0.0, %v692_v62  ;;  %v841_v41 = vmul.f32 %v840_v40, %v1391_v8 }
 0x159   : > { %v697_v3 = vsel %vm696_vm4, %v695_v2, 0.0 }
 0x15a   : > { %v737_v5 = vmul.f32 %v736_v63, %v697_v3  ;;  %v721_v6 = vmul.f32 %v720_v0, %v697_v3  ;;  %v713_v12 = vmul.f32 %v712_v4, %v697_v3  ;;  %v753_v13 = vmul.f32 %v752_v7, %v697_v3 }
 0x15b   : > { %v769_v20 = vmul.f32 %v768_v17, %v697_v3  ;;  %v785_v24 = vmul.f32 %v784_v22, %v697_v3  ;;  %v801_v28 = vmul.f32 %v800_v26, %v697_v3  ;;  %v817_v32 = vmul.f32 %v816_v30, %v697_v3 }
 0x15c   : > { %739 = vrot.lane.b32.xlu0 %v737_v5, %s1203_s6  ;;  %723 = vrot.lane.b32.xlu1 %v721_v6, %s1204_s17  ;;  %v714_v16 = vadd.f32 %v713_v12, %v709_v10  ;;  %v833_v36 = vmul.f32 %v832_v34, %v697_v3 }
 0x15e   : > { %v718_v19 = vadd.f32 %v717_v15, %v714_v16 }
 0x160   : > { %755 = vrot.lane.b32.xlu0 %v753_v13, %s1205_s16  ;;  %731 = vrot.lane.b32.xlu1 %v729_v14, %s1204_s17 }
 0x164   : > { %771 = vrot.lane.b32.xlu0 %v769_v20, %s1206_s26  ;;  %747 = vrot.lane.b32.xlu1 %v745_v21, %s1203_s6  ;;  %s191_s6 = scalar_lea.vmem [#allocation9], %s1344_s3 }
 0x165   : > { %s862_s17 = sshll.u32 %s191_s6, 4  ;;  %s863_s17 = int_to_ptr.vmem [resolvable:$true] %s862_s17 }
 0x166   : > { %s1112_s20 = scalar_lea.vmem %s863_s17, 16 }
 0x167   : > { %p1113_p3 = scmp.ne.s32.totalorder %s863_s17, %s1112_s20 }
 0x168   : > { %787 = vrot.lane.b32.xlu0 %v785_v24, %s1207_s23  ;;  %763 = vrot.lane.b32.xlu1 %v761_v25, %s1205_s16  ;;  %s860_s16 = scalar_lea.hbm %s1451_s2, %s981_s7 }
 0x169   : > { %p1114_p12 = pnand %p1113_p3, %p1462_p7 }
 0x16b   : > { %p1115_p2 = pneg %p1114_p12 }
 0x16c   : > { %803 = vrot.lane.b32.xlu0 %v801_v28, %s1208_s4  ;;  %779 = vrot.lane.b32.xlu1 %v777_v29, %s1206_s26  ;;  %s1211_s26 = smov [#allocation9]  }
 0x16d   : > { %s1116_s12 = sshll.u32 %s1211_s26, 4  ;;  %s1117_s12 = int_to_ptr.vmem [resolvable:$false] %s1116_s12 }
 0x16e   : > { %s1118_s27 = scalar_lea.vmem %s1117_s12, 32  ;;  %p1119_p1 = scmp.lt.s32.totalorder %s863_s17, %s1117_s12 }
 0x16f   : > { %p1120_p10 = scmp.lt.s32.totalorder %s1118_s27, %s1112_s20 }
 0x170   : > { %819 = vrot.lane.b32.xlu0 %v817_v32, %s1209_s30  ;;  %795 = vrot.lane.b32.xlu1 %v793_v33, %s1207_s23 }
 0x171   : > { %p1121_p8 = por %p1120_p10, %p1119_p1 }
 0x173   : > { %p1122_p9 = pnand %p1121_p8, %p1115_p2 }
 0x174   : > { %835 = vrot.lane.b32.xlu0 %v833_v36, %s1210_s5  ;;  %811 = vrot.lane.b32.xlu1 %v809_v37, %s1208_s4 }
 0x178   : > { %827 = vrot.lane.b32.xlu1 %v825_v39, %s1209_s30 }
 0x17c   : > { %843 = vrot.lane.b32.xlu1 %v841_v41, %s1210_s5 }
 0x1ce   : > { %v740_v42 = vpop.permute.xlu0 %739  ;;  %v724_v43 = vpop.permute.xlu1 %723 }
 0x1cf   : > { %v726_v44 = vadd.f32 %v724_v43, %v718_v19 }
 0x1d2   : > { %v756_v45 = vpop.permute.xlu0 %755  ;;  %v732_v46 = vpop.permute.xlu1 %731 }
 0x1d3   : > { %v734_v47 = vadd.f32 %v732_v46, %v726_v44 }
 0x1d5   : > { %v742_v48 = vadd.f32 %v740_v42, %v734_v47 }
 0x1d6   : > { %v772_v49 = vpop.permute.xlu0 %771  ;;  %v748_v50 = vpop.permute.xlu1 %747 }
 0x1d7   : > { %v750_v51 = vadd.f32 %v748_v50, %v742_v48 }
 0x1d9   : > { %v758_v52 = vadd.f32 %v756_v45, %v750_v51 }
 0x1da   : > { %v788_v53 = vpop.permute.xlu0 %787  ;;  %v764_v54 = vpop.permute.xlu1 %763 }
 0x1db   : > { %v766_v55 = vadd.f32 %v764_v54, %v758_v52 }
 0x1dd   : > { %v774_v56 = vadd.f32 %v772_v49, %v766_v55 }
 0x1de   : > { %v780_v57 = vpop.permute.xlu1 %779  ;;  %v804_v59 = vpop.permute.xlu0 %803 }
 0x1df   : > { %v782_v58 = vadd.f32 %v780_v57, %v774_v56 }
 0x1e1   : > { %v790_v60 = vadd.f32 %v788_v53, %v782_v58 }
 0x1e2   : > { %v796_v61 = vpop.permute.xlu1 %795  ;;  %v820_v0 = vpop.permute.xlu0 %819 }
 0x1e3   : > { %v798_v62 = vadd.f32 %v796_v61, %v790_v60 }
 0x1e5   : > { %v806_v63 = vadd.f32 %v804_v59, %v798_v62 }
 0x1e6   : > { %v812_v1 = vpop.permute.xlu1 %811  ;;  %v836_v6 = vpop.permute.xlu0 %835 }
 0x1e7   : > { %v814_v2 = vadd.f32 %v812_v1, %v806_v63 }
 0x1e9   : > { %v822_v3 = vadd.f32 %v820_v0, %v814_v2 }
 0x1ea   : > { %v828_v4 = vpop.permute.xlu1 %827 }
 0x1eb   : > { %v830_v5 = vadd.f32 %v828_v4, %v822_v3 }
 0x1ed   : > { %v838_v7 = vadd.f32 %v836_v6, %v830_v5 }
 0x1ee   : > { %v844_v8 = vpop.permute.xlu1 %843 }
 0x1ef   : > { %v846_v9 = vadd.f32 %v844_v8, %v838_v7 }
 0x1f1   : > { %848 = vst.msk [vmem:[%s191_s6] sm:$0x1] %vm262_vm2, %v846_v9 }
 0x1f2   : > { %1125 = shalt.err (!%p1122_p9)
}
 0x1f3   : > { %s1126_s19 = scalar_lea.hbm %s860_s16, 16  ;;  %s1130_s24 = scalar_lea.hbm %s1451_s2, 32 }
 0x1f4   : > { %p1127_p13 = scmp.ne.s32.totalorder %s860_s16, %s1126_s19  ;;  %p1131_p11 = scmp.lt.s32.totalorder %s860_s16, %s1451_s2 }
 0x1f5   : > { %p1132_p5 = scmp.lt.s32.totalorder %s1130_s24, %s1126_s19 }
 0x1f6   : > { %p1128_p4 = pnand %p1127_p13, %p1462_p7 }
 0x1f7   : > { %p1133_p0 = por %p1132_p5, %p1131_p11 }
 0x1f8   : > { %p1129_p6 = pneg %p1128_p4 }
 0x1fa   : > { %p1134_p3 = pnand %p1133_p0, %p1129_p6 }
 0x1fc   : > { %1137 = shalt.err (!%p1134_p3)
}
 0x1fd   : > { %991 = dma.vmem_to_hbm [thread:$0]  (%p1462_p7), %s863_s17, 16, %s860_s16, %s850_s18  }
 0x1fe PF: > { %s874_s30 = sand.u32 1, %s1176_s9   ;;  %p1463_p12 = scmp.ne.s32.totalorder %s1457_s22, 0 }
 0x1ff   : > { %p1464_p2 = scmp.ge.s32.totalorder %s1196_s14, 2  ;;  %s875_s5 = scalar_lea.sflag [#allocation6], %s874_s30 }
 0x201   : > { %p1002_p1 = pnand %p1464_p2, %p1463_p12 }
 0x203   : > { %p1003_p10 = pneg %p1002_p1 }
 0x205   : > { %1171 = dma.done.wait (%p1003_p10), %s875_s5, 16  }
 0x206   : > { %1173 = vsyncadd (%p1003_p10), %s875_s5, 4294967280  ;;  %s19_s14 = sadd.s32 1, %s1196_s14   ;;  %s1465_s9 = smov %s1180_s10 }
 0x207   : > { %p16_p8 = scmp.ge.s32.totalorder %s19_s14, 4   ;;  %s1466_s10 = smov %s1184_s11 }
 0x208   : > { %s1467_s11 = smov %s1335_s28  ;;  %s1468_s12 = smov %s1192_s13 }
 0x209   : > { %s1469_s13 = smov %s1471_s29  ;;  %18 = sbr.rel (!%p16_p8) target bundleno = 7 (0x7), region = 90 }
 0x20e   :  { %879 = vsyncpa [#allocation5], 1 }
 0x20f   :  { %881 = vsyncpa [#allocation5 + $0x1], 1 }
 0x210   :  { %882 = vsyncpa [#allocation6], 1 }
 0x211   :  { %884 = vsyncpa [#allocation6 + $0x1], 1 }
 0x212   :  { %885 = vsyncpa [#allocation7], 1 }
 0x213   :  { %887 = vsyncpa [#allocation7 + $0x1], 1 }

</bundles_post_ra>
